<compile_context>
chip_gen: v7x
topology: tpu7x:2x2x1
jax: 0.10.0
libtpu: 0.0.40
codegen_flags: <defaults>
</compile_context>

<pallas_src>
import functools
import math

import jax
import jax.numpy as jnp
from jax.experimental import pallas as pl
from jax.experimental.pallas import tpu as pltpu


def _round_up(x, m):
    return ((x + m - 1) // m) * m


def _pad2(a, rows, cols):
    return jnp.pad(a, ((0, rows - a.shape[0]), (0, cols - a.shape[1])))


def _mlp_spatial_filter_kernel(
    x_ref,
    w11_ref, b11_ref,
    w12_ref, b12_ref,
    w2123_ref, b2123_ref,   # fc21 | fc23 fused along the output dim
    w22_ref, b22_ref,
    wv_ref, bv_ref,
    value_ref, value_act_ref,
    *, hidden_pad,
):
    """One row-tile of the full MLPSpatialFilter forward (activation=ReLU)."""
    relu = lambda t: jnp.maximum(t, 0.0)  # nn.ReLU

    x_in = x_ref[...]                       # native dtype, straight to the MXU
    x32 = x_in.astype(jnp.float32)          # f32 copy for the residual add

    # x = act(fc12(act(fc11(x))) + x)
    h = relu(jnp.dot(x_in, w11_ref[...], preferred_element_type=jnp.float32)
             + b11_ref[...])
    x1 = relu(jnp.dot(h, w12_ref[...], preferred_element_type=jnp.float32)
              + b12_ref[...] + x32)

    # x = act(fc22(act(fc21(x))) + fc23(x))   [fc21 and fc23 fused: one dot]
    y = (jnp.dot(x1, w2123_ref[...], preferred_element_type=jnp.float32)
         + b2123_ref[...])
    h21 = relu(y[:, :hidden_pad])           # fc21 path (128-aligned slice)
    y23 = y[:, hidden_pad:]                 # fc23 path (128-aligned slice)
    x2 = relu(jnp.dot(h21, w22_ref[...], preferred_element_type=jnp.float32)
              + b22_ref[...] + y23)

    # out['value'] = value(x); out['value_activation'] = act(value(x))
    v = jnp.dot(x2, wv_ref[...], preferred_element_type=jnp.float32) + bv_ref[...]
    value_ref[...] = v.astype(value_ref.dtype)
    value_act_ref[...] = relu(v).astype(value_act_ref.dtype)


def mlp_spatial_filter_pallas(x, params, *, row_tile=512):
    """x: [..., num_sensor] -> dict of [..., num_hidden] arrays."""
    num_sensor = params["w11"].shape[0]
    num_hidden = params["wv"].shape[1]

    lead_shape = x.shape[:-1]
    m = math.prod(lead_shape) if lead_shape else 1

    # Lane-pad feature dims to multiples of 128 (vreg lane width).
    sp = _round_up(num_sensor, 128)
    hp = _round_up(num_hidden, 128)

    # Row tiling: single step for small M, else 512-row tiles (padded rows are
    # zeros; their outputs are sliced away).  Per-step VMEM stays tiny relative
    # to v7x's 32 MiB scoped / 64 MiB physical budget.
    if m <= row_tile:
        tm = _round_up(max(m, 1), 8)
        m_pad = tm
    else:
        tm = row_tile
        m_pad = _round_up(m, tm)
    grid = (m_pad // tm,)

    x2d = x.reshape(m, num_sensor)
    x2d = jnp.pad(x2d, ((0, m_pad - m), (0, sp - num_sensor)))

    # Zero-pad weights/biases; fuse fc21|fc23 along the output dim.
    w11 = _pad2(params["w11"], sp, sp); b11 = _pad2(params["b11"], 1, sp)
    w12 = _pad2(params["w12"], sp, sp); b12 = _pad2(params["b12"], 1, sp)
    w21 = _pad2(params["w21"], sp, hp); b21 = _pad2(params["b21"], 1, hp)
    w23 = _pad2(params["w23"], sp, hp); b23 = _pad2(params["b23"], 1, hp)
    w2123 = jnp.concatenate([w21, w23], axis=1)       # [sp, 2*hp]
    b2123 = jnp.concatenate([b21, b23], axis=1)       # [1, 2*hp]
    w22 = _pad2(params["w22"], hp, hp); b22 = _pad2(params["b22"], 1, hp)
    wv = _pad2(params["wv"], hp, hp);   bv = _pad2(params["bv"], 1, hp)

    # Constant-index weight blocks stay resident across the row grid (Pallas
    # does not re-DMA blocks whose index is unchanged).
    # TODO(synk): at production DeepSIF sizes (H ~ 500+), single-buffer these
    # via pipeline_mode and column-tile w22/wv with a second grid axis.
    def wspec(shape):
        return pl.BlockSpec(shape, lambda i: (0, 0))

    in_specs = [
        pl.BlockSpec((tm, sp), lambda i: (i, 0)),        # x rows
        wspec((sp, sp)), wspec((1, sp)),                 # fc11
        wspec((sp, sp)), wspec((1, sp)),                 # fc12
        wspec((sp, 2 * hp)), wspec((1, 2 * hp)),         # fc21 | fc23 fused
        wspec((hp, hp)), wspec((1, hp)),                 # fc22
        wspec((hp, hp)), wspec((1, hp)),                 # value
    ]
    out_specs = [
        pl.BlockSpec((tm, hp), lambda i: (i, 0)),
        pl.BlockSpec((tm, hp), lambda i: (i, 0)),
    ]

    kernel = functools.partial(_mlp_spatial_filter_kernel, hidden_pad=hp)

    value2d, value_act2d = pl.pallas_call(
        kernel,
        out_shape=[
            jax.ShapeDtypeStruct((m_pad, hp), x.dtype),
            jax.ShapeDtypeStruct((m_pad, hp), x.dtype),
        ],
        grid_spec=pltpu.PrefetchScalarGridSpec(
            num_scalar_prefetch=0,
            grid=grid,
            in_specs=in_specs,
            out_specs=out_specs,
        ),
        compiler_params=pltpu.CompilerParams(
            dimension_semantics=("parallel",)),
    )(
        x2d,
        w11, b11,
        w12, b12,
        w2123, b2123,
        w22, b22,
        wv, bv,
    )

    value = value2d[:m, :num_hidden].reshape(*lead_shape, num_hidden)
    value_act = value_act2d[:m, :num_hidden].reshape(*lead_shape, num_hidden)
    return {"value": value, "value_activation": value_act}


def init_params(key, num_sensor, num_hidden, dtype=jnp.float32):
    """Deterministic init mimicking nn.Linear default (uniform +/- 1/sqrt(fan_in)).

    Weights are stored pre-transposed as [in_features, out_features];
    biases as [1, out_features].
    """
    def linear(k, fan_in, fan_out):
        kw, kb = jax.random.split(k)
        bound = 1.0 / jnp.sqrt(fan_in)
        w = jax.random.uniform(kw, (fan_in, fan_out), dtype, -bound, bound)
        b = jax.random.uniform(kb, (1, fan_out), dtype, -bound, bound)
        return w, b

    keys = jax.random.split(key, 6)
    p = {}
    p["w11"], p["b11"] = linear(keys[0], num_sensor, num_sensor)
    p["w12"], p["b12"] = linear(keys[1], num_sensor, num_sensor)
    p["w21"], p["b21"] = linear(keys[2], num_sensor, num_hidden)
    p["w22"], p["b22"] = linear(keys[3], num_hidden, num_hidden)
    p["w23"], p["b23"] = linear(keys[4], num_sensor, num_hidden)
    p["wv"], p["bv"] = linear(keys[5], num_hidden, num_hidden)
    return p


def mlp_spatial_filter_ref(x, p):
    """Pure-JAX reference matching the PyTorch forward (activation=ReLU)."""
    act = jax.nn.relu
    h = act(x @ p["w11"] + p["b11"][0])
    x = act(h @ p["w12"] + p["b12"][0] + x)
    h = act(x @ p["w21"] + p["b21"][0])
    x = act(h @ p["w22"] + p["b22"][0] + x @ p["w23"] + p["b23"][0])
    v = x @ p["wv"] + p["bv"][0]
    return {"value": v, "value_activation": act(v)}


if __name__ == "__main__":
    batch, seq = 2, 8
    num_sensor, num_hidden = 16, 32   # activation = 'ReLU'

    key = jax.random.PRNGKey(0)
    kx, kp = jax.random.split(key)
    x = jax.random.normal(kx, (batch, seq, num_sensor), dtype=jnp.float32)
    params = init_params(kp, num_sensor, num_hidden)

    out = mlp_spatial_filter_pallas(x, params)
    jax.block_until_ready(out)

    ref = mlp_spatial_filter_ref(x.reshape(-1, num_sensor), params)
    assert out["value"].shape == (batch, seq, num_hidden)
    assert out["value_activation"].shape == (batch, seq, num_hidden)
    assert jnp.allclose(out["value"].reshape(-1, num_hidden),
                        ref["value"], atol=1e-5, rtol=1e-5)
    assert jnp.allclose(out["value_activation"].reshape(-1, num_hidden),
                        ref["value_activation"], atol=1e-5, rtol=1e-5)

    print("KERNEL_OK")
</pallas_src>

<mosaic_0001>
module attributes {stable_mosaic.version = 11 : i64} {
  func.func @_mlp_spatial_filter_kernel(%arg0: i32, %arg1: memref<16x128xf32, #tpu.memory_space<vmem>>, %arg2: memref<128x128xf32, #tpu.memory_space<vmem>>, %arg3: memref<1x128xf32, #tpu.memory_space<vmem>>, %arg4: memref<128x128xf32, #tpu.memory_space<vmem>>, %arg5: memref<1x128xf32, #tpu.memory_space<vmem>>, %arg6: memref<128x256xf32, #tpu.memory_space<vmem>>, %arg7: memref<1x256xf32, #tpu.memory_space<vmem>>, %arg8: memref<128x128xf32, #tpu.memory_space<vmem>>, %arg9: memref<1x128xf32, #tpu.memory_space<vmem>>, %arg10: memref<128x128xf32, #tpu.memory_space<vmem>>, %arg11: memref<1x128xf32, #tpu.memory_space<vmem>>, %arg12: memref<16x128xf32, #tpu.memory_space<vmem>>, %arg13: memref<16x128xf32, #tpu.memory_space<vmem>>) attributes {dimension_semantics = [#tpu.dimension_semantics<parallel>], iteration_bounds = array<i64: 1>, scalar_prefetch = 0 : i64, scratch_operands = 0 : i64, tpu.core_type = #tpu.core_type<tc>, window_params = [{transform_indices = @transform_0, window_bounds = array<i64: 16, 128>}, {pipeline_mode = #tpu.pipeline_mode<synchronous>, transform_indices = @transform_1, window_bounds = array<i64: 128, 128>}, {pipeline_mode = #tpu.pipeline_mode<synchronous>, transform_indices = @transform_2, window_bounds = array<i64: 1, 128>}, {pipeline_mode = #tpu.pipeline_mode<synchronous>, transform_indices = @transform_3, window_bounds = array<i64: 128, 128>}, {pipeline_mode = #tpu.pipeline_mode<synchronous>, transform_indices = @transform_4, window_bounds = array<i64: 1, 128>}, {pipeline_mode = #tpu.pipeline_mode<synchronous>, transform_indices = @transform_5, window_bounds = array<i64: 128, 256>}, {pipeline_mode = #tpu.pipeline_mode<synchronous>, transform_indices = @transform_6, window_bounds = array<i64: 1, 256>}, {pipeline_mode = #tpu.pipeline_mode<synchronous>, transform_indices = @transform_7, window_bounds = array<i64: 128, 128>}, {pipeline_mode = #tpu.pipeline_mode<synchronous>, transform_indices = @transform_8, window_bounds = array<i64: 1, 128>}, {pipeline_mode = #tpu.pipeline_mode<synchronous>, transform_indices = @transform_9, window_bounds = array<i64: 128, 128>}, {pipeline_mode = #tpu.pipeline_mode<synchronous>, transform_indices = @transform_10, window_bounds = array<i64: 1, 128>}, {transform_indices = @transform_11, window_bounds = array<i64: 16, 128>}, {transform_indices = @transform_12, window_bounds = array<i64: 16, 128>}]} {
    %c0 = arith.constant 0 : index
    %c0_0 = arith.constant 0 : index
    %0 = vector.load %arg1[%c0, %c0_0] : memref<16x128xf32, #tpu.memory_space<vmem>>, vector<16x128xf32>
    %c0_1 = arith.constant 0 : index
    %c0_2 = arith.constant 0 : index
    %1 = vector.load %arg2[%c0_1, %c0_2] : memref<128x128xf32, #tpu.memory_space<vmem>>, vector<128x128xf32>
    %cst = arith.constant dense<0.000000e+00> : vector<16x128xf32>
    %2 = tpu.matmul %0, %1, %cst {dimension_numbers = #tpu.dot_dimension_numbers<[1], [0], [0], [1], [0, 0, 1, 1], [], []>} : vector<16x128xf32>, vector<128x128xf32>, vector<16x128xf32> -> vector<16x128xf32>
    %c0_3 = arith.constant 0 : index
    %c0_4 = arith.constant 0 : index
    %3 = vector.load %arg3[%c0_3, %c0_4] : memref<1x128xf32, #tpu.memory_space<vmem>>, vector<1x128xf32>
    %4 = vector.broadcast %3 : vector<1x128xf32> to vector<16x128xf32>
    %5 = arith.addf %2, %4 : vector<16x128xf32>
    %cst_5 = arith.constant 0.000000e+00 : f32
    %6 = vector.broadcast %cst_5 : f32 to vector<16x128xf32>
    %7 = arith.maximumf %5, %6 : vector<16x128xf32>
    %c0_6 = arith.constant 0 : index
    %c0_7 = arith.constant 0 : index
    %8 = vector.load %arg4[%c0_6, %c0_7] : memref<128x128xf32, #tpu.memory_space<vmem>>, vector<128x128xf32>
    %cst_8 = arith.constant dense<0.000000e+00> : vector<16x128xf32>
    %9 = tpu.matmul %7, %8, %cst_8 {dimension_numbers = #tpu.dot_dimension_numbers<[1], [0], [0], [1], [0, 0, 1, 1], [], []>} : vector<16x128xf32>, vector<128x128xf32>, vector<16x128xf32> -> vector<16x128xf32>
    %c0_9 = arith.constant 0 : index
    %c0_10 = arith.constant 0 : index
    %10 = vector.load %arg5[%c0_9, %c0_10] : memref<1x128xf32, #tpu.memory_space<vmem>>, vector<1x128xf32>
    %11 = vector.broadcast %10 : vector<1x128xf32> to vector<16x128xf32>
    %12 = arith.addf %9, %11 : vector<16x128xf32>
    %13 = arith.addf %12, %0 : vector<16x128xf32>
    %cst_11 = arith.constant 0.000000e+00 : f32
    %14 = vector.broadcast %cst_11 : f32 to vector<16x128xf32>
    %15 = arith.maximumf %13, %14 : vector<16x128xf32>
    %c0_12 = arith.constant 0 : index
    %c0_13 = arith.constant 0 : index
    %16 = vector.load %arg6[%c0_12, %c0_13] : memref<128x256xf32, #tpu.memory_space<vmem>>, vector<128x256xf32>
    %cst_14 = arith.constant dense<0.000000e+00> : vector<16x256xf32>
    %17 = tpu.matmul %15, %16, %cst_14 {dimension_numbers = #tpu.dot_dimension_numbers<[1], [0], [0], [1], [0, 0, 1, 1], [], []>} : vector<16x128xf32>, vector<128x256xf32>, vector<16x256xf32> -> vector<16x256xf32>
    %c0_15 = arith.constant 0 : index
    %c0_16 = arith.constant 0 : index
    %18 = vector.load %arg7[%c0_15, %c0_16] : memref<1x256xf32, #tpu.memory_space<vmem>>, vector<1x256xf32>
    %19 = vector.broadcast %18 : vector<1x256xf32> to vector<16x256xf32>
    %20 = arith.addf %17, %19 : vector<16x256xf32>
    %21 = vector.extract_strided_slice %20 {offsets = [0, 0], sizes = [16, 128], strides = [1, 1]} : vector<16x256xf32> to vector<16x128xf32>
    %cst_17 = arith.constant 0.000000e+00 : f32
    %22 = vector.broadcast %cst_17 : f32 to vector<16x128xf32>
    %23 = arith.maximumf %21, %22 : vector<16x128xf32>
    %24 = vector.extract_strided_slice %20 {offsets = [0, 128], sizes = [16, 128], strides = [1, 1]} : vector<16x256xf32> to vector<16x128xf32>
    %c0_18 = arith.constant 0 : index
    %c0_19 = arith.constant 0 : index
    %25 = vector.load %arg8[%c0_18, %c0_19] : memref<128x128xf32, #tpu.memory_space<vmem>>, vector<128x128xf32>
    %cst_20 = arith.constant dense<0.000000e+00> : vector<16x128xf32>
    %26 = tpu.matmul %23, %25, %cst_20 {dimension_numbers = #tpu.dot_dimension_numbers<[1], [0], [0], [1], [0, 0, 1, 1], [], []>} : vector<16x128xf32>, vector<128x128xf32>, vector<16x128xf32> -> vector<16x128xf32>
    %c0_21 = arith.constant 0 : index
    %c0_22 = arith.constant 0 : index
    %27 = vector.load %arg9[%c0_21, %c0_22] : memref<1x128xf32, #tpu.memory_space<vmem>>, vector<1x128xf32>
    %28 = vector.broadcast %27 : vector<1x128xf32> to vector<16x128xf32>
    %29 = arith.addf %26, %28 : vector<16x128xf32>
    %30 = arith.addf %29, %24 : vector<16x128xf32>
    %cst_23 = arith.constant 0.000000e+00 : f32
    %31 = vector.broadcast %cst_23 : f32 to vector<16x128xf32>
    %32 = arith.maximumf %30, %31 : vector<16x128xf32>
    %c0_24 = arith.constant 0 : index
    %c0_25 = arith.constant 0 : index
    %33 = vector.load %arg10[%c0_24, %c0_25] : memref<128x128xf32, #tpu.memory_space<vmem>>, vector<128x128xf32>
    %cst_26 = arith.constant dense<0.000000e+00> : vector<16x128xf32>
    %34 = tpu.matmul %32, %33, %cst_26 {dimension_numbers = #tpu.dot_dimension_numbers<[1], [0], [0], [1], [0, 0, 1, 1], [], []>} : vector<16x128xf32>, vector<128x128xf32>, vector<16x128xf32> -> vector<16x128xf32>
    %c0_27 = arith.constant 0 : index
    %c0_28 = arith.constant 0 : index
    %35 = vector.load %arg11[%c0_27, %c0_28] : memref<1x128xf32, #tpu.memory_space<vmem>>, vector<1x128xf32>
    %36 = vector.broadcast %35 : vector<1x128xf32> to vector<16x128xf32>
    %37 = arith.addf %34, %36 : vector<16x128xf32>
    %c0_29 = arith.constant 0 : index
    %c0_30 = arith.constant 0 : index
    %38 = vector.load %arg12[%c0_29, %c0_30] : memref<16x128xf32, #tpu.memory_space<vmem>>, vector<16x128xf32>
    tpu.vector_store %arg12[%c0_29, %c0_30], %37 {strides = array<i32>} : memref<16x128xf32, #tpu.memory_space<vmem>>, vector<16x128xf32>,
    %cst_31 = arith.constant 0.000000e+00 : f32
    %39 = vector.broadcast %cst_31 : f32 to vector<16x128xf32>
    %40 = arith.maximumf %37, %39 : vector<16x128xf32>
    %c0_32 = arith.constant 0 : index
    %c0_33 = arith.constant 0 : index
    %41 = vector.load %arg13[%c0_32, %c0_33] : memref<16x128xf32, #tpu.memory_space<vmem>>, vector<16x128xf32>
    tpu.vector_store %arg13[%c0_32, %c0_33], %40 {strides = array<i32>} : memref<16x128xf32, #tpu.memory_space<vmem>>, vector<16x128xf32>,
    return
  }
  func.func @transform_0(%arg0: i32) -> (i32, i32) {
    %c0_i32 = arith.constant 0 : i32
    %c0_i32_0 = arith.constant 0 : i32
    return %arg0, %c0_i32 : i32, i32
  }
  func.func @transform_1(%arg0: i32) -> (i32, i32) {
    %c0_i32 = arith.constant 0 : i32
    %c0_i32_0 = arith.constant 0 : i32
    %c0_i32_1 = arith.constant 0 : i32
    return %c0_i32, %c0_i32_0 : i32, i32
  }
  func.func @transform_2(%arg0: i32) -> (i32, i32) {
    %c0_i32 = arith.constant 0 : i32
    %c0_i32_0 = arith.constant 0 : i32
    %c0_i32_1 = arith.constant 0 : i32
    return %c0_i32, %c0_i32_0 : i32, i32
  }
  func.func @transform_3(%arg0: i32) -> (i32, i32) {
    %c0_i32 = arith.constant 0 : i32
    %c0_i32_0 = arith.constant 0 : i32
    %c0_i32_1 = arith.constant 0 : i32
    return %c0_i32, %c0_i32_0 : i32, i32
  }
  func.func @transform_4(%arg0: i32) -> (i32, i32) {
    %c0_i32 = arith.constant 0 : i32
    %c0_i32_0 = arith.constant 0 : i32
    %c0_i32_1 = arith.constant 0 : i32
    return %c0_i32, %c0_i32_0 : i32, i32
  }
  func.func @transform_5(%arg0: i32) -> (i32, i32) {
    %c0_i32 = arith.constant 0 : i32
    %c0_i32_0 = arith.constant 0 : i32
    %c0_i32_1 = arith.constant 0 : i32
    return %c0_i32, %c0_i32_0 : i32, i32
  }
  func.func @transform_6(%arg0: i32) -> (i32, i32) {
    %c0_i32 = arith.constant 0 : i32
    %c0_i32_0 = arith.constant 0 : i32
    %c0_i32_1 = arith.constant 0 : i32
    return %c0_i32, %c0_i32_0 : i32, i32
  }
  func.func @transform_7(%arg0: i32) -> (i32, i32) {
    %c0_i32 = arith.constant 0 : i32
    %c0_i32_0 = arith.constant 0 : i32
    %c0_i32_1 = arith.constant 0 : i32
    return %c0_i32, %c0_i32_0 : i32, i32
  }
  func.func @transform_8(%arg0: i32) -> (i32, i32) {
    %c0_i32 = arith.constant 0 : i32
    %c0_i32_0 = arith.constant 0 : i32
    %c0_i32_1 = arith.constant 0 : i32
    return %c0_i32, %c0_i32_0 : i32, i32
  }
  func.func @transform_9(%arg0: i32) -> (i32, i32) {
    %c0_i32 = arith.constant 0 : i32
    %c0_i32_0 = arith.constant 0 : i32
    %c0_i32_1 = arith.constant 0 : i32
    return %c0_i32, %c0_i32_0 : i32, i32
  }
  func.func @transform_10(%arg0: i32) -> (i32, i32) {
    %c0_i32 = arith.constant 0 : i32
    %c0_i32_0 = arith.constant 0 : i32
    %c0_i32_1 = arith.constant 0 : i32
    return %c0_i32, %c0_i32_0 : i32, i32
  }
  func.func @transform_11(%arg0: i32) -> (i32, i32) {
    %c0_i32 = arith.constant 0 : i32
    %c0_i32_0 = arith.constant 0 : i32
    return %arg0, %c0_i32 : i32, i32
  }
  func.func @transform_12(%arg0: i32) -> (i32, i32) {
    %c0_i32 = arith.constant 0 : i32
    %c0_i32_0 = arith.constant 0 : i32
    return %arg0, %c0_i32 : i32, i32
  }
}

</mosaic_0001>

<bundles_post_ra>
// kernel: tpu_custom_call.1
= control target key start
LH: loop header
LB: loop body
LE: loop exit
PB: predicated region body
PF: predicated region fallthrough
CT: control target
= control target key end

     0   :  { %18 = vsyncpa [#allocation3], 0  ;;  %s1516_s0 = inlined_call_operand.hbm [shape: f32[16,128], index: 0, kind: input, shape index: {}]   ;;  %s1517_s1 = inlined_call_operand.hbm [shape: f32[128,128], index: 1, kind: input, shape index: {}]   ;;  %s1518_s2 = inlined_call_operand.vmem [shape: f32[1,128], index: 2, kind: input, shape index: {}]   ;;  %s1519_s3 = inlined_call_operand.hbm [shape: f32[128,128], index: 3, kind: input, shape index: {}]   ;;  %s1520_s4 = inlined_call_operand.vmem [shape: f32[1,128], index: 4, kind: input, shape index: {}]   ;;  %s1521_s5 = inlined_call_operand.hbm [shape: f32[128,256], index: 5, kind: input, shape index: {}]   ;;  %s1522_s6 = inlined_call_operand.vmem [shape: f32[1,256], index: 6, kind: input, shape index: {}]   ;;  %s1523_s7 = inlined_call_operand.hbm [shape: f32[128,128], index: 7, kind: input, shape index: {}]   ;;  %s1524_s8 = inlined_call_operand.vmem [shape: f32[1,128], index: 8, kind: input, shape index: {}]   ;;  %s1525_s9 = inlined_call_operand.hbm [shape: f32[128,128], index: 9, kind: input, shape index: {}]   ;;  %s1526_s10 = inlined_call_operand.vmem [shape: f32[1,128], index: 10, kind: input, shape index: {}]   ;;  %s1527_s11 = inlined_call_operand.hbm [shape: f32[16,128], index: 11, kind: output, shape index: {0}]   ;;  %s1528_s12 = inlined_call_operand.hbm [shape: f32[16,128], index: 12, kind: output, shape index: {1}]  }
   0x1   :  { %19 = vsyncpa [#allocation6], 0 }
   0x2   :  { %20 = vsyncpa [#allocation9], 0 }
   0x3   :  { %21 = vsyncpa [#allocation12], 0 }
   0x4   :  { %22 = vsyncpa [#allocation4], 0 }
   0x5   :  { %23 = vsyncpa [#allocation15], 0  ;;  %s1270_s21 = smov [#allocation5]   ;;  %s1271_s23 = smov [#allocation8]  }
   0x6   :  { %s41_s22 = sshll.u32 %s1270_s21, 4  ;;  %s69_s24 = sshll.u32 %s1271_s23, 4  ;;  %s42_s22 = int_to_ptr.vmem [resolvable:$true] %s41_s22  ;;  %s1348_s24 = int_to_ptr.vmem [resolvable:$true] %s69_s24 }
   0x7   :  { %s1082_s27 = scalar_lea.hbm %s1517_s1, 2048 }
   0x8   :  { %p1083_p0 = scmp.ne.s32.totalorder %s1517_s1, %s1082_s27  ;;  %p1086_p1 = scmp.lt.u32.totalorder %s1082_s27, %s1517_s1 }
   0xa   :  { %p1088_p2 = pnand %p1086_p1, %p1083_p0 }
   0xc   :  { %1091 = shalt.err (!%p1088_p2)
}
   0xd   :  { %s1092_s14 = scalar_lea.vmem %s42_s22, 2048  ;;  %p1097_p4 = scmp.lt.s32.totalorder %s42_s22, %s42_s22 }
   0xe   :  { %p1093_p3 = scmp.ne.s32.totalorder %s42_s22, %s1092_s14  ;;  %p1098_p5 = scmp.lt.s32.totalorder %s1092_s14, %s1092_s14 }
  0x10   :  { %p1099_p6 = por %p1098_p5, %p1097_p4 }
  0x12   :  { %p1100_p7 = pnand %p1099_p6, %p1093_p3 }
  0x14   :  { %1103 = shalt.err (!%p1100_p7)
}
  0x15   :  { %s1272_s15 = smov 128   ;;  %s1273_s16 = smov 8  }
  0x16   :  { %47 = dma.hbm_to_vmem [thread:$0]  %s1517_s1, 2048, %s42_s22, [#allocation6], %s1272_s15, %s1272_s15, %s1273_s16  }
  0x17   :  { %s1104_s21 = scalar_lea.hbm %s1521_s5, 4096 }
  0x18   :  { %p1105_p8 = scmp.ne.s32.totalorder %s1521_s5, %s1104_s21  ;;  %p1108_p9 = scmp.lt.u32.totalorder %s1104_s21, %s1521_s5 }
  0x1a   :  { %p1110_p10 = pnand %p1108_p9, %p1105_p8 }
  0x1c   :  { %1113 = shalt.err (!%p1110_p10)
}
  0x1d   :  { %s1114_s28 = scalar_lea.vmem %s1348_s24, 4096  ;;  %p1119_p12 = scmp.lt.s32.totalorder %s1348_s24, %s1348_s24 }
  0x1e   :  { %p1115_p11 = scmp.ne.s32.totalorder %s1348_s24, %s1114_s28  ;;  %p1120_p13 = scmp.lt.s32.totalorder %s1114_s28, %s1114_s28 }
  0x20   :  { %p1121_p0 = por %p1120_p13, %p1119_p12 }
  0x22   :  { %p1122_p1 = pnand %p1121_p0, %p1115_p11 }
  0x24   :  { %1125 = shalt.err (!%p1122_p1)
}
  0x25   :  { %s1274_s1 = smov 256   ;;  %s1275_s22 = smov 16  }
  0x26   :  { %75 = dma.hbm_to_vmem [thread:$0]  %s1521_s5, 4096, %s1348_s24, [#allocation9], %s1274_s1, %s1274_s1, %s1275_s22  }
  0x27   :  { %s1276_s13 = smov [#allocation2]   ;;  %s1277_s17 = smov [#allocation7]  }
  0x28   :  { %s29_s14 = sshll.u32 %s1276_s13, 4  ;;  %s55_s18 = sshll.u32 %s1277_s17, 4  ;;  %s30_s14 = int_to_ptr.vmem [resolvable:$true] %s29_s14  ;;  %s1382_s18 = int_to_ptr.vmem [resolvable:$true] %s55_s18 }
  0x29   :  { %s1126_s21 = scalar_lea.hbm %s1516_s0, 256 }
  0x2a   :  { %p1127_p2 = scmp.ne.s32.totalorder %s1516_s0, %s1126_s21  ;;  %p1130_p3 = scmp.lt.u32.totalorder %s1126_s21, %s1516_s0 }
  0x2c   :  { %p1132_p4 = pnand %p1130_p3, %p1127_p2 }
  0x2e   :  { %1135 = shalt.err (!%p1132_p4)
}
  0x2f   :  { %s1136_s5 = scalar_lea.vmem %s30_s14, 256  ;;  %p1141_p6 = scmp.lt.s32.totalorder %s30_s14, %s30_s14 }
  0x30   :  { %p1137_p5 = scmp.ne.s32.totalorder %s30_s14, %s1136_s5  ;;  %p1142_p7 = scmp.lt.s32.totalorder %s1136_s5, %s1136_s5 }
  0x32   :  { %p1143_p8 = por %p1142_p7, %p1141_p6 }
  0x34   :  { %p1144_p9 = pnand %p1143_p8, %p1137_p5 }
  0x36   :  { %1147 = shalt.err (!%p1144_p9)
}
  0x37   :  { %35 = dma.hbm_to_vmem [thread:$0]  %s1516_s0, 256, %s30_s14, [#allocation3], %s1272_s15, %s1272_s15, %s1273_s16  }
  0x38   :  { %s1148_s29 = scalar_lea.hbm %s1519_s3, 2048 }
  0x39   :  { %p1149_p10 = scmp.ne.s32.totalorder %s1519_s3, %s1148_s29  ;;  %p1152_p11 = scmp.lt.u32.totalorder %s1148_s29, %s1519_s3 }
  0x3b   :  { %p1154_p12 = pnand %p1152_p11, %p1149_p10 }
  0x3d   :  { %1157 = shalt.err (!%p1154_p12)
}
  0x3e   :  { %s1158_s20 = scalar_lea.vmem %s1382_s18, 2048  ;;  %p1163_p0 = scmp.lt.s32.totalorder %s1382_s18, %s1382_s18 }
  0x3f   :  { %p1159_p13 = scmp.ne.s32.totalorder %s1382_s18, %s1158_s20  ;;  %p1164_p1 = scmp.lt.s32.totalorder %s1158_s20, %s1158_s20 }
  0x41   :  { %p1165_p2 = por %p1164_p1, %p1163_p0 }
  0x43   :  { %p1166_p3 = pnand %p1165_p2, %p1159_p13 }
  0x45   :  { %1169 = shalt.err (!%p1166_p3)
}
  0x46   :  { %61 = dma.hbm_to_vmem [thread:$0]  %s1519_s3, 2048, %s1382_s18, [#allocation6], %s1272_s15, %s1272_s15, %s1273_s16  }
  0x47   :  { %s1278_s21 = smov [#allocation10]   ;;  %s1279_s25 = smov [#allocation11]  }
  0x48   :  { %s83_s23 = sshll.u32 %s1278_s21, 4  ;;  %s97_s26 = sshll.u32 %s1279_s25, 4  ;;  %s84_s23 = int_to_ptr.vmem [resolvable:$true] %s83_s23  ;;  %s1419_s26 = int_to_ptr.vmem [resolvable:$true] %s97_s26 }
  0x49   :  { %s1170_s24 = scalar_lea.hbm %s1523_s7, 2048 }
  0x4a   :  { %p1171_p4 = scmp.ne.s32.totalorder %s1523_s7, %s1170_s24  ;;  %p1174_p5 = scmp.lt.u32.totalorder %s1170_s24, %s1523_s7 }
  0x4c   :  { %p1176_p6 = pnand %p1174_p5, %p1171_p4 }
  0x4e   :  { %1179 = shalt.err (!%p1176_p6)
}
  0x4f   :  { %s1180_s3 = scalar_lea.vmem %s84_s23, 2048  ;;  %p1185_p8 = scmp.lt.s32.totalorder %s84_s23, %s84_s23 }
  0x50   :  { %p1181_p7 = scmp.ne.s32.totalorder %s84_s23, %s1180_s3  ;;  %p1186_p9 = scmp.lt.s32.totalorder %s1180_s3, %s1180_s3 }
  0x52   :  { %p1187_p10 = por %p1186_p9, %p1185_p8 }
  0x54   :  { %p1188_p11 = pnand %p1187_p10, %p1181_p7 }
  0x56   :  { %1191 = shalt.err (!%p1188_p11)
}
  0x57   :  { %89 = dma.hbm_to_vmem [thread:$0]  %s1523_s7, 2048, %s84_s23, [#allocation9], %s1272_s15, %s1272_s15, %s1273_s16  }
  0x58   :  { %s1192_s19 = scalar_lea.hbm %s1525_s9, 2048 }
  0x59   :  { %p1193_p12 = scmp.ne.s32.totalorder %s1525_s9, %s1192_s19  ;;  %p1196_p13 = scmp.lt.u32.totalorder %s1192_s19, %s1525_s9 }
  0x5b   :  { %p1198_p0 = pnand %p1196_p13, %p1193_p12 }
  0x5d   :  { %1201 = shalt.err (!%p1198_p0)
}
  0x5e   :  { %s1202_s25 = scalar_lea.vmem %s1419_s26, 2048  ;;  %p1207_p2 = scmp.lt.s32.totalorder %s1419_s26, %s1419_s26 }
  0x5f   :  { %p1203_p1 = scmp.ne.s32.totalorder %s1419_s26, %s1202_s25  ;;  %p1208_p3 = scmp.lt.s32.totalorder %s1202_s25, %s1202_s25 }
  0x61   :  { %p1209_p4 = por %p1208_p3, %p1207_p2 }
  0x63   :  { %p1210_p5 = pnand %p1209_p4, %p1203_p1 }
  0x65   :  { %1213 = shalt.err (!%p1210_p5)
}
  0x66   :  { %103 = dma.hbm_to_vmem [thread:$0]  %s1525_s9, 2048, %s1419_s26, [#allocation12], %s1272_s15, %s1272_s15, %s1273_s16  }
  0x67   :  { %1258 = dma.done.wait [#allocation3], 256  }
  0x68   :  { %1259 = vsyncadd [#allocation3], 4294967040 }
  0x69   :  { %1260 = dma.done.wait [#allocation6], 4096  }
  0x6a   :  { %1261 = vsyncadd [#allocation6], 4294963200 }
  0x6b   :  { %1262 = dma.done.wait [#allocation9], 6144  }
  0x6c   :  { %1263 = vsyncadd [#allocation9], 4294961152 }
  0x6d   :  { %1264 = dma.done.wait [#allocation12], 2048  }
  0x6e   :  { %1265 = vsyncadd [#allocation12], 4294965248  ;;  %v126_v0 = vld [vmem:[#allocation5] sm:$0xff]  ;;  %v127_v1 = vld [vmem:[#allocation5 + $0x8] sm:$0xff]  ;;  %s1281_s22 = smov [#allocation13]  }
  0x6f   :  { %v128_v2 = vld [vmem:[#allocation5 + $0x10] sm:$0xff]  ;;  %v909_v3 = vpack.c.bf16 %v127_v1, %v126_v0  ;;  %v129_v4 = vld [vmem:[#allocation5 + $0x18] sm:$0xff]  ;;  %v130_v6 = vld [vmem:[#allocation5 + $0x20] sm:$0xff]  ;;  %s662_s29 = sshll.u32 %s1281_s22, 4  ;;  %s663_s29 = int_to_ptr.vmem [resolvable:$true] %s662_s29 }
  0x70   :  { %v913_v5 = vpack.c.bf16 %v129_v4, %v128_v2  ;;  %v131_v7 = vld [vmem:[#allocation5 + $0x28] sm:$0xff]  ;;  %v132_v9 = vld [vmem:[#allocation5 + $0x30] sm:$0xff]  ;;  %v133_v10 = vld [vmem:[#allocation5 + $0x38] sm:$0xff]  ;;  %s1214_s18 = scalar_lea.vmem %s663_s29, 256  ;;  %p1219_p7 = scmp.lt.s32.totalorder %s663_s29, %s663_s29 }
  0x71   :  { %910 = vmatprep.subr.bf16.mxu0 %v909_v3  ;;  %v917_v8 = vpack.c.bf16 %v131_v7, %v130_v6  ;;  %v1456_v11 = vld [vmem:[#allocation2] sm:$0xff]  ;;  %v226_v12 = vld [vmem:[#allocation7] sm:$0xff]  ;;  %v227_v13 = vld [vmem:[#allocation7 + $0x8] sm:$0xff]  ;;  %v921_v20 = vpack.c.bf16 %v133_v10, %v132_v9  ;;  %p1215_p6 = scmp.ne.s32.totalorder %s663_s29, %s1214_s18  ;;  %p1220_p8 = scmp.lt.s32.totalorder %s1214_s18, %s1214_s18 }
  0x72   :  { %912 = vmatpush3.bf16.msra.mxu0 %v909_v3  ;;  %801 = vmatprep.mubr.f32.mxu0 %v1456_v11  ;;  %v228_v14 = vld [vmem:[#allocation7 + $0x10] sm:$0xff]  ;;  %v941_v15 = vpack.c.bf16 %v227_v13, %v226_v12  ;;  %v229_v16 = vld [vmem:[#allocation7 + $0x18] sm:$0xff]  ;;  %v230_v18 = vld [vmem:[#allocation7 + $0x20] sm:$0xff] }
  0x73   :  { %914 = vmatprep.subr.bf16.mxu0 %v913_v5  ;;  %v945_v17 = vpack.c.bf16 %v229_v16, %v228_v14  ;;  %v231_v19 = vld [vmem:[#allocation7 + $0x28] sm:$0xff]  ;;  %v134_v21 = vld [vmem:[#allocation5 + $0x40] sm:$0xff]  ;;  %v232_v24 = vld [vmem:[#allocation7 + $0x30] sm:$0xff]  ;;  %p1221_p9 = por %p1220_p8, %p1219_p7 }
  0x74   :  { %942 = vmatprep.subr.bf16.mxu1 %v941_v15  ;;  %v135_v22 = vld [vmem:[#allocation5 + $0x48] sm:$0xff]  ;;  %v949_v23 = vpack.c.bf16 %v231_v19, %v230_v18  ;;  %v233_v25 = vld [vmem:[#allocation7 + $0x38] sm:$0xff]  ;;  %v136_v27 = vld [vmem:[#allocation5 + $0x50] sm:$0xff] }
  0x75   :  { %944 = vmatpush3.bf16.msra.mxu1 %v941_v15  ;;  %v925_v26 = vpack.c.bf16 %v135_v22, %v134_v21  ;;  %v137_v28 = vld [vmem:[#allocation5 + $0x58] sm:$0xff]  ;;  %v953_v29 = vpack.c.bf16 %v233_v25, %v232_v24  ;;  %v234_v30 = vld [vmem:[#allocation7 + $0x40] sm:$0xff]  ;;  %v235_v31 = vld [vmem:[#allocation7 + $0x48] sm:$0xff]  ;;  %p1222_p10 = pnand %p1221_p9, %p1215_p6 }
  0x76   :  { %916 = vmatpush3.bf16.msra.mxu0 %v913_v5  ;;  %946 = vmatprep.subr.bf16.mxu1 %v945_v17  ;;  %v929_v32 = vpack.c.bf16 %v137_v28, %v136_v27  ;;  %v138_v33 = vld [vmem:[#allocation5 + $0x60] sm:$0xff]  ;;  %v139_v34 = vld [vmem:[#allocation5 + $0x68] sm:$0xff]  ;;  %v957_v35 = vpack.c.bf16 %v235_v31, %v234_v30  ;;  %v236_v36 = vld [vmem:[#allocation7 + $0x50] sm:$0xff] }
  0x77   :  { %918 = vmatprep.subr.bf16.mxu0 %v917_v8  ;;  %v237_v37 = vld [vmem:[#allocation7 + $0x58] sm:$0xff]  ;;  %v933_v38 = vpack.c.bf16 %v139_v34, %v138_v33  ;;  %v140_v39 = vld [vmem:[#allocation5 + $0x70] sm:$0xff]  ;;  %v238_v42 = vld [vmem:[#allocation7 + $0x60] sm:$0xff] }
  0x78   :  { %v141_v40 = vld [vmem:[#allocation5 + $0x78] sm:$0xff]  ;;  %v961_v41 = vpack.c.bf16 %v237_v37, %v236_v36  ;;  %v239_v43 = vld [vmem:[#allocation7 + $0x68] sm:$0xff]  ;;  %v240_v47 = vld [vmem:[#allocation7 + $0x70] sm:$0xff] }
  0x79   :  { %948 = vmatpush3.bf16.msra.mxu1 %v945_v17  ;;  %v937_v44 = vpack.c.bf16 %v141_v40, %v140_v39  ;;  %v965_v45 = vpack.c.bf16 %v239_v43, %v238_v42  ;;  %v1459_v46 = vld [vmem:[#allocation2 + $0x8] sm:$0xff]  ;;  %v329_v50 = vld [vmem:[#allocation8 + $0x8] sm:$0xff]  ;;  %v328_v52 = vld [vmem:[#allocation8] sm:$0xff]  ;;  %v1280_v42 = vmov 0.0  }
  0x7a   :  { %920 = vmatpush3.bf16.msra.mxu0 %v917_v8  ;;  %950 = vmatprep.subr.bf16.mxu1 %v949_v23  ;;  %v241_v48 = vld [vmem:[#allocation7 + $0x78] sm:$0xff]  ;;  %v330_v54 = vld [vmem:[#allocation8 + $0x10] sm:$0xff]  ;;  %v333_v55 = vld [vmem:[#allocation8 + $0x28] sm:$0xff] }
  0x7b   :  { %922 = vmatprep.subr.bf16.mxu0 %v921_v20  ;;  %v969_v49 = vpack.c.bf16 %v241_v48, %v240_v47  ;;  %v331_v51 = vld [vmem:[#allocation8 + $0x18] sm:$0xff]  ;;  %v975_v57 = vpack.c.bf16 %v330_v54, %v328_v52  ;;  %v332_v59 = vld [vmem:[#allocation8 + $0x20] sm:$0xff]  ;;  %v334_v60 = vld [vmem:[#allocation8 + $0x30] sm:$0xff] }
  0x7c   :  { %v973_v53 = vpack.c.bf16 %v331_v51, %v329_v50  ;;  %v335_v56 = vld [vmem:[#allocation8 + $0x38] sm:$0xff]  ;;  %v337_v61 = vld [vmem:[#allocation8 + $0x48] sm:$0xff]  ;;  %v979_v63 = vpack.c.bf16 %v334_v60, %v332_v59  ;;  %v336_v1 = vld [vmem:[#allocation8 + $0x40] sm:$0xff] }
  0x7d   :  { %952 = vmatpush3.bf16.msra.mxu1 %v949_v23  ;;  %v977_v58 = vpack.c.bf16 %v335_v56, %v333_v55  ;;  %v339_v62 = vld [vmem:[#allocation8 + $0x58] sm:$0xff]  ;;  %v338_v2 = vld [vmem:[#allocation8 + $0x50] sm:$0xff]  ;;  %v341_v3 = vld [vmem:[#allocation8 + $0x68] sm:$0xff] }
  0x7e   :  { %924 = vmatpush3.bf16.msra.mxu0 %v921_v20  ;;  %954 = vmatprep.subr.bf16.mxu1 %v953_v29  ;;  %v981_v0 = vpack.c.bf16 %v339_v62, %v337_v61  ;;  %v343_v4 = vld [vmem:[#allocation8 + $0x78] sm:$0xff]  ;;  %v983_v5 = vpack.c.bf16 %v338_v2, %v336_v1  ;;  %v340_v7 = vld [vmem:[#allocation8 + $0x60] sm:$0xff]  ;;  %v342_v8 = vld [vmem:[#allocation8 + $0x70] sm:$0xff] }
  0x7f   :  { %926 = vmatprep.subr.bf16.mxu0 %v925_v26  ;;  %v985_v6 = vpack.c.bf16 %v343_v4, %v341_v3  ;;  %v345_v9 = vld [vmem:[#allocation8 + $0x88] sm:$0xff]  ;;  %v347_v10 = vld [vmem:[#allocation8 + $0x98] sm:$0xff]  ;;  %v987_v12 = vpack.c.bf16 %v342_v8, %v340_v7  ;;  %v344_v14 = vld [vmem:[#allocation8 + $0x80] sm:$0xff] }
  0x80   :  { %v989_v13 = vpack.c.bf16 %v347_v10, %v345_v9  ;;  %v346_v15 = vld [vmem:[#allocation8 + $0x90] sm:$0xff]  ;;  %v349_v16 = vld [vmem:[#allocation8 + $0xa8] sm:$0xff]  ;;  %v351_v17 = vld [vmem:[#allocation8 + $0xb8] sm:$0xff] }
  0x81   :  { %956 = vmatpush3.bf16.msra.mxu1 %v953_v29  ;;  %v991_v18 = vpack.c.bf16 %v346_v15, %v344_v14  ;;  %v993_v19 = vpack.c.bf16 %v351_v17, %v349_v16  ;;  %v348_v20 = vld [vmem:[#allocation8 + $0xa0] sm:$0xff]  ;;  %v350_v21 = vld [vmem:[#allocation8 + $0xb0] sm:$0xff]  ;;  %v353_v30 = vld [vmem:[#allocation8 + $0xc8] sm:$0xff] }
  0x82   :  { %928 = vmatpush3.bf16.msra.mxu0 %v925_v26  ;;  %958 = vmatprep.subr.bf16.mxu1 %v957_v35  ;;  %v995_v22 = vpack.c.bf16 %v350_v21, %v348_v20  ;;  %v693_v23 = vld [vmem:[%s1518_s2] ss:$0 sm:$0xff]  ;;  %v355_v31 = vld [vmem:[#allocation8 + $0xd8] sm:$0xff]  ;;  %v352_v33 = vld [vmem:[#allocation8 + $0xc0] sm:$0xff] }
  0x83   :  { %930 = vmatprep.subr.bf16.mxu0 %v929_v32  ;;  %v354_v34 = vld [vmem:[#allocation8 + $0xd0] sm:$0xff]  ;;  %v357_v36 = vld [vmem:[#allocation8 + $0xe8] sm:$0xff]  ;;  %v359_v37 = vld [vmem:[#allocation8 + $0xf8] sm:$0xff] }
  0x84   :  { %v356_v39 = vld [vmem:[#allocation8 + $0xe0] sm:$0xff]  ;;  %v358_v40 = vld [vmem:[#allocation8 + $0xf0] sm:$0xff]  ;;  %v454_v48 = vld [vmem:[#allocation10 + $0x18] sm:$0xff] }
  0x85   :  { %960 = vmatpush3.bf16.msra.mxu1 %v957_v35  ;;  %v999_v35 = vpack.c.bf16 %v354_v34, %v352_v33  ;;  %v451_v43 = vld [vmem:[#allocation10] sm:$0xff]  ;;  %v456_v51 = vld [vmem:[#allocation10 + $0x28] sm:$0xff]  ;;  %v458_v54 = vld [vmem:[#allocation10 + $0x38] sm:$0xff] }
  0x86   :  { %932 = vmatpush3.bf16.msra.mxu0 %v929_v32  ;;  %962 = vmatprep.subr.bf16.mxu1 %v961_v41  ;;  %v997_v32 = vpack.c.bf16 %v355_v31, %v353_v30  ;;  %v455_v50 = vld [vmem:[#allocation10 + $0x20] sm:$0xff]  ;;  %v461_v59 = vld [vmem:[#allocation10 + $0x50] sm:$0xff]  ;;  %v462_v60 = vld [vmem:[#allocation10 + $0x58] sm:$0xff]  ;;  %v362_v30 = vlaneseq }
  0x87   :  { %934 = vmatprep.subr.bf16.mxu0 %v933_v38  ;;  %v1013_v52 = vpack.c.bf16 %v456_v51, %v455_v50  ;;  %v459_v56 = vld [vmem:[#allocation10 + $0x40] sm:$0xff]  ;;  %v1025_v61 = vpack.c.bf16 %v462_v60, %v461_v59  ;;  %v694_v62 = vld [vmem:[%s1520_s4] ss:$0 sm:$0xff]  ;;  %v464_v8 = vld [vmem:[#allocation10 + $0x68] sm:$0xff] }
  0x88   :  { %v463_v7 = vld [vmem:[#allocation10 + $0x60] sm:$0xff]  ;;  %v465_v10 = vld [vmem:[#allocation10 + $0x70] sm:$0xff]  ;;  %v554_v15 = vld [vmem:[#allocation11 + $0x8] sm:$0xff]  ;;  %v363_v31 = vshrl.u32 %v362_v30, 7 }
  0x89   :  { %964 = vmatpush3.bf16.msra.mxu1 %v961_v41  ;;  %v1003_v41 = vpack.c.bf16 %v358_v40, %v356_v39  ;;  %v1029_v9 = vpack.c.bf16 %v464_v8, %v463_v7  ;;  %v553_v14 = vld [vmem:[#allocation11] sm:$0xff]  ;;  %v559_v21 = vld [vmem:[#allocation11 + $0x30] sm:$0xff] }
  0x8a   :  { %936 = vmatpush3.bf16.msra.mxu0 %v933_v38  ;;  %966 = vmatprep.subr.bf16.mxu1 %v965_v45  ;;  %v1001_v38 = vpack.c.bf16 %v359_v37, %v357_v36  ;;  %v1037_v16 = vpack.c.bf16 %v554_v15, %v553_v14  ;;  %v360_v33 = vld [vmem:[%s1522_s6] sm:$0x3]  ;;  %v368_v50 = vsub.s32 1, %v363_v31 }
  0x8b   :  { %938 = vmatprep.subr.bf16.mxu0 %v937_v44 }
  0x8c   :  { %v369_v51 = vrot.slane %v360_v33, %v368_v50 }
  0x8d   :  { %968 = vmatpush3.bf16.msra.mxu1 %v965_v45  ;;  %v453_v45 = vld [vmem:[#allocation10 + $0x10] sm:$0xff] }
  0x8e   :  { %940 = vmatpush3.bf16.msra.mxu0 %v937_v44  ;;  %970 = vmatprep.subr.bf16.mxu1 %v969_v49  ;;  %v452_v44 = vld [vmem:[#allocation10 + $0x8] sm:$0xff] }
  0x8f   :  { %974 = vmatprep.subr.bf16.mxu0 %v973_v53  ;;  %v1005_v47 = vpack.c.bf16 %v452_v44, %v451_v43  ;;  %v457_v53 = vld [vmem:[#allocation10 + $0x30] sm:$0xff]  ;;  %v565_v43 = vld [vmem:[#allocation11 + $0x60] sm:$0xff]  ;;  %v566_v44 = vld [vmem:[#allocation11 + $0x68] sm:$0xff] }
  0x90   :  { %v1017_v55 = vpack.c.bf16 %v458_v54, %v457_v53 }
  0x91   :  { %802 = vmatmul.mubr.f32.vlgmr.msra.gmra.mrb[0].mxu0 %v1459_v46  ;;  %972 = vmatpush3.bf16.msra.mxu1 %v969_v49  ;;  %v1009_v49 = vpack.c.bf16 %v454_v48, %v453_v45  ;;  %v1061_v45 = vpack.c.bf16 %v566_v44, %v565_v43  ;;  %v568_v48 = vld [vmem:[#allocation11 + $0x78] sm:$0xff] }
  0x92   :  { %976 = vmatpush1.bf16.msra.mxu0 %v975_v57  ;;  %436 = vmatprep.mubr.f32.mxu0 %v1280_v42  ;;  %v460_v57 = vld [vmem:[#allocation10 + $0x48] sm:$0xff] }
  0x93   :  { %978 = vmatprep.subr.bf16.mxu0 %v977_v58  ;;  %1006 = vmatprep.subr.bf16.mxu1 %v1005_v47  ;;  %v1021_v58 = vpack.c.bf16 %v460_v57, %v459_v56 }
  0x96   :  { %980 = vmatpush1.bf16.msra.mxu0 %v979_v63 }
  0x97   :  { %982 = vmatprep.subr.bf16.mxu0 %v981_v0 }
  0x9a   :  { %984 = vmatpush1.bf16.msra.mxu0 %v983_v5 }
  0x9b   :  { %986 = vmatprep.subr.bf16.mxu0 %v985_v6 }
  0x9e   :  { %988 = vmatpush1.bf16.msra.mxu0 %v987_v12  ;;  %v466_v12 = vld [vmem:[#allocation10 + $0x78] sm:$0xff] }
  0x9f   :  { %990 = vmatprep.subr.bf16.mxu0 %v989_v13  ;;  %v1033_v13 = vpack.c.bf16 %v466_v12, %v465_v10 }
  0xa2   :  { %992 = vmatpush1.bf16.msra.mxu0 %v991_v18  ;;  %v557_v18 = vld [vmem:[#allocation11 + $0x20] sm:$0xff] }
  0xa3   :  { %994 = vmatprep.subr.bf16.mxu0 %v993_v19  ;;  %v558_v19 = vld [vmem:[#allocation11 + $0x28] sm:$0xff] }
  0xa4   :  { %v1045_v20 = vpack.c.bf16 %v558_v19, %v557_v18 }
  0xa6   :  { %996 = vmatpush1.bf16.msra.mxu0 %v995_v22  ;;  %v560_v22 = vld [vmem:[#allocation11 + $0x38] sm:$0xff] }
  0xa7   :  { %998 = vmatprep.subr.bf16.mxu0 %v997_v32  ;;  %v364_v32 = vsub.s32 0, %v363_v31 }
  0xa9   :  { %v365_v34 = vrot.slane %v360_v33, %v364_v32 }
  0xaa   :  { %1000 = vmatpush1.bf16.msra.mxu0 %v999_v35 }
  0xab   :  { %1002 = vmatprep.subr.bf16.mxu0 %v1001_v38 }
  0xae   :  { %1004 = vmatpush1.bf16.msra.mxu0 %v1003_v41 }
  0xaf   :  { %1038 = vmatprep.subr.bf16.mxu0 %v1037_v16 }
 0x164   :  { %v803_v24 = vpop.f32.mrb[0].mxu0 }
 0x165   :  { %v221_v25 = vadd.f32 %v803_v24, %v693_v23  ;;  %v215_v26 = vpop.f32.mrb[1].mxu0  ;;  %v561_v24 = vld [vmem:[#allocation11 + $0x40] sm:$0xff] }
 0x166   :  { %v216_v27 = vadd.f32 %v693_v23, %v215_v26  ;;  %v1049_v23 = vpack.c.bf16 %v560_v22, %v559_v21 }
 0x167   :  { %v225_v29 = vmax.f32 %v221_v25, 0.0  ;;  %v562_v25 = vld [vmem:[#allocation11 + $0x48] sm:$0xff] }
 0x168   :  { %v224_v28 = vmax.f32 %v216_v27, 0.0  ;;  %v1053_v26 = vpack.c.bf16 %v562_v25, %v561_v24  ;;  %v563_v27 = vld [vmem:[#allocation11 + $0x50] sm:$0xff] }
 0x16a   :  { %836 = vmatprep.mubr.f32.mxu1 %v224_v28  ;;  %v564_v28 = vld [vmem:[#allocation11 + $0x58] sm:$0xff] }
 0x16b   :  { %837 = vmatmul.mubr.f32.vlgmr.msra.gmra.mrb[0].mxu1 %v225_v29  ;;  %v1057_v29 = vpack.c.bf16 %v564_v28, %v563_v27 }
 0x16c   :  { %1008 = vmatpush3.bf16.msra.mxu1 %v1005_v47  ;;  %v567_v47 = vld [vmem:[#allocation11 + $0x70] sm:$0xff] }
 0x16d   :  { %1010 = vmatprep.subr.bf16.mxu1 %v1009_v49 }
 0x170   :  { %1012 = vmatpush3.bf16.msra.mxu1 %v1009_v49  ;;  %v1065_v49 = vpack.c.bf16 %v568_v48, %v567_v47 }
 0x171   :  { %1014 = vmatprep.subr.bf16.mxu1 %v1013_v52 }
 0x174   :  { %1016 = vmatpush3.bf16.msra.mxu1 %v1013_v52  ;;  %v695_v52 = vld [vmem:[%s1524_s8] ss:$0 sm:$0xff]  ;;  %s1282_s8 = smov [#allocation14]  }
 0x175   :  { %1018 = vmatprep.subr.bf16.mxu1 %v1017_v55  ;;  %s674_s3 = sshll.u32 %s1282_s8, 4  ;;  %s1479_s3 = int_to_ptr.vmem [resolvable:$true] %s674_s3 }
 0x178   :  { %1020 = vmatpush3.bf16.msra.mxu1 %v1017_v55 }
 0x179   :  { %1022 = vmatprep.subr.bf16.mxu1 %v1021_v58 }
 0x17c   :  { %1024 = vmatpush3.bf16.msra.mxu1 %v1021_v58 }
 0x17d   :  { %1026 = vmatprep.subr.bf16.mxu1 %v1025_v61 }
 0x180   :  { %1028 = vmatpush3.bf16.msra.mxu1 %v1025_v61 }
 0x181   :  { %1030 = vmatprep.subr.bf16.mxu1 %v1029_v9 }
 0x184   :  { %1032 = vmatpush3.bf16.msra.mxu1 %v1029_v9 }
 0x185   :  { %1034 = vmatprep.subr.bf16.mxu1 %v1033_v13 }
 0x188   :  { %1036 = vmatpush3.bf16.msra.mxu1 %v1033_v13 }
 0x23e   :  { %v838_v63 = vpop.f32.mrb[0].mxu1 }
 0x23f   :  { %v315_v0 = vpop.f32.mrb[1].mxu1  ;;  %v321_v1 = vadd.f32 %v838_v63, %v694_v62  ;;  %v696_v63 = vld [vmem:[%s1526_s10] ss:$0 sm:$0xff] }
 0x240   :  { %v316_v2 = vadd.f32 %v694_v62, %v315_v0 }
 0x241   :  { %v325_v4 = vadd.f32 %v321_v1, %v1459_v46  ;;  %v556_v46 = vld [vmem:[#allocation11 + $0x18] sm:$0xff] }
 0x242   :  { %v324_v3 = vadd.f32 %v316_v2, %v1456_v11  ;;  %v555_v11 = vld [vmem:[#allocation11 + $0x10] sm:$0xff] }
 0x243   :  { %v327_v6 = vmax.f32 %v325_v4, 0.0  ;;  %v1041_v17 = vpack.c.bf16 %v556_v46, %v555_v11 }
 0x244   :  { %v326_v5 = vmax.f32 %v324_v3, 0.0 }
 0x246   :  { %437 = vmatmul.mubr.f32.vlgmr.msra.gmra.mrb[2].mxu0 %v326_v5 }
 0x247   :  { %442 = vmatprep.mubr.f32.mxu0 %v1280_v42  ;;  %1040 = vmatpush3.bf16.msra.mxu0 %v1037_v16 }
 0x248   :  { %1042 = vmatprep.subr.bf16.mxu0 %v1041_v17 }
 0x24a   :  { %443 = vmatmul.mubr.f32.gmra.mrb[4].mxu0 %v327_v6 }
 0x24b   :  { %1044 = vmatpush3.bf16.msra.mxu0 %v1041_v17 }
 0x24c   :  { %1046 = vmatprep.subr.bf16.mxu0 %v1045_v20 }
 0x24f   :  { %1048 = vmatpush3.bf16.msra.mxu0 %v1045_v20 }
 0x250   :  { %1050 = vmatprep.subr.bf16.mxu0 %v1049_v23 }
 0x253   :  { %1052 = vmatpush3.bf16.msra.mxu0 %v1049_v23 }
 0x254   :  { %1054 = vmatprep.subr.bf16.mxu0 %v1053_v26 }
 0x257   :  { %1056 = vmatpush3.bf16.msra.mxu0 %v1053_v26 }
 0x258   :  { %1058 = vmatprep.subr.bf16.mxu0 %v1057_v29 }
 0x25b   :  { %1060 = vmatpush3.bf16.msra.mxu0 %v1057_v29 }
 0x25c   :  { %1062 = vmatprep.subr.bf16.mxu0 %v1061_v45 }
 0x25f   :  { %1064 = vmatpush3.bf16.msra.mxu0 %v1061_v45 }
 0x260   :  { %1066 = vmatprep.subr.bf16.mxu0 %v1065_v49 }
 0x263   :  { %1068 = vmatpush3.bf16.msra.mxu0 %v1065_v49 }
 0x319   :  { %v438_v35 = vpop.f32.mrb[2].mxu0 }
 0x31a   :  { %v439_v36 = vadd.f32 %v438_v35, %v365_v34  ;;  %v440_v37 = vpop.f32.mrb[3].mxu0 }
 0x31b   :  { %v441_v57 = vadd.f32 %v440_v37, %v369_v51 }
 0x31c   :  { %v449_v38 = vmax.f32 %v439_v36, 0.0 }
 0x31d   :  { %v444_v39 = vpop.f32.mrb[4].mxu0 }
 0x31e   :  { %v445_v40 = vadd.f32 %v444_v39, %v365_v34  ;;  %v446_v41 = vpop.f32.mrb[5].mxu0  ;;  %871 = vmatprep.mubr.f32.mxu1 %v449_v38 }
 0x31f   :  { %v447_v54 = vadd.f32 %v446_v41, %v369_v51 }
 0x320   :  { %v450_v42 = vmax.f32 %v445_v40, 0.0 }
 0x322   :  { %872 = vmatmul.mubr.f32.vlgmr.msra.gmra.mrb[2].mxu1 %v450_v42 }
 0x3f5   :  { %v873_v53 = vpop.f32.mrb[2].mxu1 }
 0x3f6   :  { %v546_v55 = vadd.f32 %v873_v53, %v695_v52  ;;  %v540_v56 = vpop.f32.mrb[3].mxu1 }
 0x3f7   :  { %v541_v58 = vadd.f32 %v695_v52, %v540_v56 }
 0x3f8   :  { %v550_v59 = vadd.f32 %v546_v55, %v447_v54 }
 0x3f9   :  { %v549_v60 = vadd.f32 %v541_v58, %v441_v57 }
 0x3fa   :  { %v552_v62 = vmax.f32 %v550_v59, 0.0 }
 0x3fb   :  { %v551_v61 = vmax.f32 %v549_v60, 0.0 }
 0x3fd   :  { %906 = vmatprep.mubr.f32.mxu0 %v551_v61 }
 0x3fe   :  { %907 = vmatmul.mubr.f32.vlgmr.msra.gmra.mrb[6].mxu0 %v552_v62 }
 0x4d1   :  { %v908_v0 = vpop.f32.mrb[6].mxu0 }
 0x4d2   :  { %v648_v1 = vadd.f32 %v908_v0, %v696_v63  ;;  %v642_v2 = vpop.f32.mrb[7].mxu0 }
 0x4d3   :  { %v643_v3 = vadd.f32 %v696_v63, %v642_v2 }
 0x4d4   :  { %652 = vst [vmem:[#allocation13 + $0x8] sm:$0xff] %v648_v1  ;;  %v654_v4 = vmax.f32 %v648_v1, 0.0 }
 0x4d5   :  { %651 = vst [vmem:[#allocation13] sm:$0xff] %v643_v3  ;;  %v653_v5 = vmax.f32 %v643_v3, 0.0 }
 0x4d6   :  { %656 = vst [vmem:[#allocation14 + $0x8] sm:$0xff] %v654_v4 }
 0x4d7   :  { %1225 = shalt.err (!%p1222_p10)
}
 0x4d8   :  { %s1226_s13 = scalar_lea.hbm %s1527_s11, 256 }
 0x4d9   :  { %p1227_p11 = scmp.ne.s32.totalorder %s1527_s11, %s1226_s13  ;;  %p1230_p12 = scmp.lt.u32.totalorder %s1226_s13, %s1527_s11 }
 0x4db   :  { %p1232_p13 = pnand %p1230_p12, %p1227_p11 }
 0x4dd   :  { %1235 = shalt.err (!%p1232_p13)
}
 0x4de   :  { %668 = dma.vmem_to_hbm [thread:$0]  %s663_s29, 256, %s1527_s11, [#allocation4], %s1272_s15, %s1272_s15, %s1273_s16   ;;  %655 = vst [vmem:[#allocation14] sm:$0xff] %v653_v5 }
 0x4df   :  { %s1236_s25 = scalar_lea.vmem %s1479_s3, 256  ;;  %p1241_p1 = scmp.lt.s32.totalorder %s1479_s3, %s1479_s3 }
 0x4e0   :  { %p1237_p0 = scmp.ne.s32.totalorder %s1479_s3, %s1236_s25  ;;  %p1242_p2 = scmp.lt.s32.totalorder %s1236_s25, %s1236_s25 }
 0x4e2   :  { %p1243_p3 = por %p1242_p2, %p1241_p1 }
 0x4e4   :  { %p1244_p4 = pnand %p1243_p3, %p1237_p0 }
 0x4e6   :  { %1247 = shalt.err (!%p1244_p4)
}
 0x4e7   :  { %s1248_s9 = scalar_lea.hbm %s1528_s12, 256 }
 0x4e8   :  { %p1249_p5 = scmp.ne.s32.totalorder %s1528_s12, %s1248_s9  ;;  %p1252_p6 = scmp.lt.u32.totalorder %s1248_s9, %s1528_s12 }
 0x4ea   :  { %p1254_p7 = pnand %p1252_p6, %p1249_p5 }
 0x4ec   :  { %1257 = shalt.err (!%p1254_p7)
}
 0x4ed   :  { %680 = dma.vmem_to_hbm [thread:$0]  %s1479_s3, 256, %s1528_s12, [#allocation15], %s1272_s15, %s1272_s15, %s1273_s16  }
 0x4ee   :  { %1266 = dma.done.wait [#allocation4], 256  }
 0x4ef   :  { %1267 = vsyncadd [#allocation4], 4294967040 }
 0x4f0   :  { %1268 = dma.done.wait [#allocation15], 256  }
 0x4f1   :  { %1269 = vsyncadd [#allocation15], 4294967040 }
 0x4f2   :  { %687 = vsyncpa [#allocation3], 1 }
 0x4f3   :  { %688 = vsyncpa [#allocation6], 1 }
 0x4f4   :  { %689 = vsyncpa [#allocation9], 1 }
 0x4f5   :  { %690 = vsyncpa [#allocation12], 1 }
 0x4f6   :  { %691 = vsyncpa [#allocation4], 1 }
 0x4f7   :  { %692 = vsyncpa [#allocation15], 1 }

</bundles_post_ra>
